<compile_context>
chip_gen: v6e
topology: v6e:2x2x1
jax: 0.10.0
libtpu: 0.0.40
codegen_flags: <defaults>
</compile_context>

<pallas_src>
import numpy as np
import jax
import jax.numpy as jnp
from jax import lax
from jax.experimental import pallas as pl
from jax.experimental.pallas import tpu as pltpu

INIT_TAU = 0.07
CLAMP = 4.6051
_DOT_NT = (((1,), (1,)), ((), ()))  # contract feature axis of both operands (no transpose)


def _ntxent_kernel(tau_ref, v_ref, t_ref, loss_ref):
    # tau_ref: (1,) f32 SMEM ; v_ref/t_ref: (B, D) VMEM ; loss_ref: (1, 1) f32 SMEM
    v = v_ref[...].astype(jnp.float32)
    t = t_ref[...].astype(jnp.float32)

    # tau clamp + exp (matches torch.clamp(tau, 0, clamp).exp())
    scale = jnp.exp(jnp.clip(tau_ref[0], 0.0, CLAMP))

    # F.normalize(x, dim=1): x * rsqrt(max(sum(x^2), 1e-24)) == x / max(||x||, 1e-12)
    v_n = v * lax.rsqrt(jnp.maximum(jnp.sum(v * v, axis=1, keepdims=True), 1e-24))
    t_n = t * lax.rsqrt(jnp.maximum(jnp.sum(t * t, axis=1, keepdims=True), 1e-24))

    # Fold temperature into the (B, D) operand (cheaper than scaling the (B, B) logits).
    v_ns = v_n * scale

    # logits_v[i, j] = <v_i, t_j> * exp(tau);  logits_t = logits_v.T via a second MXU matmul
    # so both CE directions reduce along the lane (last) axis.
    logits_v = lax.dot_general(v_ns, t_n, dimension_numbers=_DOT_NT,
                               preferred_element_type=jnp.float32)
    logits_t = lax.dot_general(t_n, v_ns, dimension_numbers=_DOT_NT,
                               preferred_element_type=jnp.float32)

    # Target logits (labels = arange(B)) == diagonal, identical for both directions.
    diag = jnp.sum(v_ns * t_n, axis=1, keepdims=True)  # (B, 1)

    B = logits_v.shape[0]
    inv_b = 1.0 / B

    # Numerically stable row-wise log-sum-exp for both directions.
    m_v = jnp.max(logits_v, axis=1, keepdims=True)
    lse_v = m_v + jnp.log(jnp.sum(jnp.exp(logits_v - m_v), axis=1, keepdims=True))
    m_t = jnp.max(logits_t, axis=1, keepdims=True)
    lse_t = m_t + jnp.log(jnp.sum(jnp.exp(logits_t - m_t), axis=1, keepdims=True))

    loss_v = jnp.sum(lse_v - diag) * inv_b
    loss_t = jnp.sum(lse_t - diag) * inv_b

    loss_ref[0, 0] = 0.5 * (loss_v + loss_t)


def learnable_ntxent_loss(v_emb, t_emb, tau):
    """v_emb, t_emb: (B, D) float32; tau: (1,) float32 parameter. Returns scalar f32 loss."""
    out = pl.pallas_call(
        _ntxent_kernel,
        out_shape=jax.ShapeDtypeStruct((1, 1), jnp.float32),
        in_specs=[
            pl.BlockSpec(memory_space=pltpu.MemorySpace.SMEM),   # tau (scalar)
            pl.BlockSpec(memory_space=pltpu.MemorySpace.VMEM),   # v_emb
            pl.BlockSpec(memory_space=pltpu.MemorySpace.VMEM),   # t_emb
        ],
        out_specs=pl.BlockSpec(memory_space=pltpu.MemorySpace.SMEM),
    )(tau, v_emb, t_emb)
    return out[0, 0]


def _reference(v_emb, t_emb, tau):
    # Pure-JAX reference mirroring the PyTorch forward, for a sanity check.
    scale = jnp.exp(jnp.clip(tau[0], 0.0, CLAMP))
    v_n = v_emb / jnp.maximum(jnp.linalg.norm(v_emb, axis=1, keepdims=True), 1e-12)
    t_n = t_emb / jnp.maximum(jnp.linalg.norm(t_emb, axis=1, keepdims=True), 1e-12)
    logits = (v_n @ t_n.T) * scale
    B = logits.shape[0]
    labels = jnp.arange(B)

    def ce(lg):
        lse = jax.scipy.special.logsumexp(lg, axis=1)
        return jnp.mean(lse - lg[jnp.arange(B), labels])

    return 0.5 * (ce(logits) + ce(logits.T))


if __name__ == "__main__":
    key = jax.random.PRNGKey(0)
    k1, k2 = jax.random.split(key)

    B, D = 8, 32
    v_emb = jax.random.normal(k1, (B, D), dtype=jnp.float32)
    t_emb = jax.random.normal(k2, (B, D), dtype=jnp.float32)

    # Parameter init: tau = log(1 / init_tau), deterministic (matches module __init__)
    tau = jnp.array([np.log(1.0 / INIT_TAU)], dtype=jnp.float32)

    loss = learnable_ntxent_loss(v_emb, t_emb, tau)
    loss = jax.block_until_ready(loss)

    ref = _reference(v_emb, t_emb, tau)
    np.testing.assert_allclose(np.asarray(loss), np.asarray(ref), rtol=1e-5, atol=1e-5)

    print("KERNEL_OK")
</pallas_src>

<mosaic_0001>
module attributes {stable_mosaic.version = 11 : i64} {
  func.func @_ntxent_kernel(%arg0: memref<1xf32, #tpu.memory_space<smem>>, %arg1: memref<8x32xf32, #tpu.memory_space<vmem>>, %arg2: memref<8x32xf32, #tpu.memory_space<vmem>>, %arg3: memref<1x1xf32, #tpu.memory_space<smem>>) attributes {dimension_semantics = [], scalar_prefetch = 0 : i64, scratch_operands = 0 : i64, tpu.core_type = #tpu.core_type<tc>} {
    %c0 = arith.constant 0 : index
    %c0_0 = arith.constant 0 : index
    %0 = vector.load %arg1[%c0, %c0_0] : memref<8x32xf32, #tpu.memory_space<vmem>>, vector<8x32xf32>
    %c0_1 = arith.constant 0 : index
    %c0_2 = arith.constant 0 : index
    %1 = vector.load %arg2[%c0_1, %c0_2] : memref<8x32xf32, #tpu.memory_space<vmem>>, vector<8x32xf32>
    %c0_3 = arith.constant 0 : index
    %2 = memref.load %arg0[%c0_3] : memref<1xf32, #tpu.memory_space<smem>>
    %cst = arith.constant 0.000000e+00 : f32
    %cst_4 = arith.constant 4.605100e+00 : f32
    %3 = arith.maximumf %cst, %2 : f32
    %4 = arith.minimumf %cst_4, %3 : f32
    %5 = math.exp %4 : f32
    %6 = arith.mulf %0, %0 : vector<8x32xf32>
    %cst_5 = arith.constant dense<0.000000e+00> : vector<8xf32>
    %7 = vector.multi_reduction <add>, %6, %cst_5 [1] : vector<8x32xf32> to vector<8xf32>
    %8 = vector.shape_cast %7 : vector<8xf32> to vector<8x1xf32>
    %cst_6 = arith.constant 1.000000e-24 : f32
    %9 = vector.broadcast %cst_6 : f32 to vector<8x1xf32>
    %10 = arith.maximumf %8, %9 : vector<8x1xf32>
    %11 = math.rsqrt %10 : vector<8x1xf32>
    %12 = vector.broadcast %11 : vector<8x1xf32> to vector<8x32xf32>
    %13 = arith.mulf %0, %12 : vector<8x32xf32>
    %14 = arith.mulf %1, %1 : vector<8x32xf32>
    %cst_7 = arith.constant dense<0.000000e+00> : vector<8xf32>
    %15 = vector.multi_reduction <add>, %14, %cst_7 [1] : vector<8x32xf32> to vector<8xf32>
    %16 = vector.shape_cast %15 : vector<8xf32> to vector<8x1xf32>
    %cst_8 = arith.constant 1.000000e-24 : f32
    %17 = vector.broadcast %cst_8 : f32 to vector<8x1xf32>
    %18 = arith.maximumf %16, %17 : vector<8x1xf32>
    %19 = math.rsqrt %18 : vector<8x1xf32>
    %20 = vector.broadcast %19 : vector<8x1xf32> to vector<8x32xf32>
    %21 = arith.mulf %1, %20 : vector<8x32xf32>
    %22 = vector.broadcast %5 : f32 to vector<8x32xf32>
    %23 = arith.mulf %13, %22 : vector<8x32xf32>
    %cst_9 = arith.constant dense<0.000000e+00> : vector<8x8xf32>
    %24 = tpu.matmul %23, %21, %cst_9 {dimension_numbers = #tpu.dot_dimension_numbers<[1], [1], [0], [0], [0, 0, 1, 0], [], []>} : vector<8x32xf32>, vector<8x32xf32>, vector<8x8xf32> -> vector<8x8xf32>
    %cst_10 = arith.constant dense<0.000000e+00> : vector<8x8xf32>
    %25 = tpu.matmul %21, %23, %cst_10 {dimension_numbers = #tpu.dot_dimension_numbers<[1], [1], [0], [0], [0, 0, 1, 0], [], []>} : vector<8x32xf32>, vector<8x32xf32>, vector<8x8xf32> -> vector<8x8xf32>
    %26 = arith.mulf %23, %21 : vector<8x32xf32>
    %cst_11 = arith.constant dense<0.000000e+00> : vector<8xf32>
    %27 = vector.multi_reduction <add>, %26, %cst_11 [1] : vector<8x32xf32> to vector<8xf32>
    %28 = vector.shape_cast %27 : vector<8xf32> to vector<8x1xf32>
    %cst_12 = arith.constant dense<0xFF800000> : vector<8xf32>
    %29 = vector.multi_reduction <maximumf>, %24, %cst_12 [1] : vector<8x8xf32> to vector<8xf32>
    %30 = vector.shape_cast %29 : vector<8xf32> to vector<8x1xf32>
    %31 = vector.broadcast %30 : vector<8x1xf32> to vector<8x8xf32>
    %32 = arith.subf %24, %31 : vector<8x8xf32>
    %33 = math.exp %32 : vector<8x8xf32>
    %cst_13 = arith.constant dense<0.000000e+00> : vector<8xf32>
    %34 = vector.multi_reduction <add>, %33, %cst_13 [1] : vector<8x8xf32> to vector<8xf32>
    %35 = vector.shape_cast %34 : vector<8xf32> to vector<8x1xf32>
    %36 = math.log %35 : vector<8x1xf32>
    %37 = arith.addf %30, %36 : vector<8x1xf32>
    %cst_14 = arith.constant dense<0xFF800000> : vector<8xf32>
    %38 = vector.multi_reduction <maximumf>, %25, %cst_14 [1] : vector<8x8xf32> to vector<8xf32>
    %39 = vector.shape_cast %38 : vector<8xf32> to vector<8x1xf32>
    %40 = vector.broadcast %39 : vector<8x1xf32> to vector<8x8xf32>
    %41 = arith.subf %25, %40 : vector<8x8xf32>
    %42 = math.exp %41 : vector<8x8xf32>
    %cst_15 = arith.constant dense<0.000000e+00> : vector<8xf32>
    %43 = vector.multi_reduction <add>, %42, %cst_15 [1] : vector<8x8xf32> to vector<8xf32>
    %44 = vector.shape_cast %43 : vector<8xf32> to vector<8x1xf32>
    %45 = math.log %44 : vector<8x1xf32>
    %46 = arith.addf %39, %45 : vector<8x1xf32>
    %47 = arith.subf %37, %28 : vector<8x1xf32>
    %48 = vector.shape_cast %47 : vector<8x1xf32> to vector<1x8x1xf32>
    %cst_16 = arith.constant dense<0.000000e+00> : vector<1xf32>
    %49 = vector.multi_reduction <add>, %48, %cst_16 [1, 2] : vector<1x8x1xf32> to vector<1xf32>
    %50 = vector.shape_cast %49 : vector<1xf32> to vector<1x1x1xf32>
    %51 = vector.extract %50[0, 0, 0] : f32 from vector<1x1x1xf32>
    %cst_17 = arith.constant 1.250000e-01 : f32
    %52 = arith.mulf %51, %cst_17 : f32
    %53 = arith.subf %46, %28 : vector<8x1xf32>
    %54 = vector.shape_cast %53 : vector<8x1xf32> to vector<1x8x1xf32>
    %cst_18 = arith.constant dense<0.000000e+00> : vector<1xf32>
    %55 = vector.multi_reduction <add>, %54, %cst_18 [1, 2] : vector<1x8x1xf32> to vector<1xf32>
    %56 = vector.shape_cast %55 : vector<1xf32> to vector<1x1x1xf32>
    %57 = vector.extract %56[0, 0, 0] : f32 from vector<1x1x1xf32>
    %cst_19 = arith.constant 1.250000e-01 : f32
    %58 = arith.mulf %57, %cst_19 : f32
    %59 = arith.addf %52, %58 : f32
    %cst_20 = arith.constant 5.000000e-01 : f32
    %60 = arith.mulf %cst_20, %59 : f32
    %c0_21 = arith.constant 0 : index
    %c0_22 = arith.constant 0 : index
    %61 = memref.load %arg3[%c0_21, %c0_22] : memref<1x1xf32, #tpu.memory_space<smem>>
    memref.store %60, %arg3[%c0_21, %c0_22] : memref<1x1xf32, #tpu.memory_space<smem>>
    return
  }
}

</mosaic_0001>

<bundles_post_ra>
// kernel: tpu_custom_call.1
= control target key start
LH: loop header
LB: loop body
LE: loop exit
PB: predicated region body
PF: predicated region fallthrough
CT: control target
= control target key end

     0   :  { %9 = vsyncpa [#allocation4], 0  ;;  %s434_s0 = inlined_call_operand.<no memory space> [shape: f32[1], index: 0, kind: input, shape index: {}]   ;;  %s435_s1 = inlined_call_operand.hbm [shape: f32[8,32], index: 1, kind: input, shape index: {}]   ;;  %s436_s2 = inlined_call_operand.hbm [shape: f32[8,32], index: 2, kind: input, shape index: {}]   ;;  %s437_s3 = inlined_call_operand.hbm [shape: f32[1,1], index: 3, kind: output, shape index: {}]  }
   0x1   :  { %10 = vsyncpa [#allocation7], 0 }
   0x2   :  { %11 = vsyncpa [#allocation5], 0  ;;  %s384_s12 = smov [#allocation3]   ;;  %s385_s14 = smov [#allocation6]  }
   0x3   :  { %s20_s13 = sshll.u32 %s384_s12, 4  ;;  %s30_s15 = sshll.u32 %s385_s14, 4  ;;  %s21_s13 = int_to_ptr.vmem [resolvable:$true] %s20_s13  ;;  %s31_s15 = int_to_ptr.vmem [resolvable:$true] %s30_s15 }
   0x4   :  { %s338_s16 = scalar_lea.vmem %s21_s13, 128  ;;  %p343_p1 = scmp.lt.s32.totalorder %s21_s13, %s21_s13 }
   0x5   :  { %p339_p0 = scmp.ne.s32.totalorder %s21_s13, %s338_s16  ;;  %p344_p2 = scmp.lt.s32.totalorder %s338_s16, %s338_s16 }
   0x7   :  { %p345_p3 = por %p344_p2, %p343_p1 }
   0x9   :  { %p346_p4 = pnand %p345_p3, %p339_p0 }
   0xb   :  { %349 = shalt.err (!%p346_p4)
}
   0xc   :  { %23 = dma.hbm_to_vmem [thread:$0]  %s435_s1, 128, %s21_s13, [#allocation4]  }
   0xd   :  { %s358_s19 = scalar_lea.vmem %s31_s15, 128  ;;  %p363_p6 = scmp.lt.s32.totalorder %s31_s15, %s31_s15 }
   0xe   :  { %p359_p5 = scmp.ne.s32.totalorder %s31_s15, %s358_s19  ;;  %p364_p7 = scmp.lt.s32.totalorder %s358_s19, %s358_s19 }
  0x10   :  { %p365_p8 = por %p364_p7, %p363_p6 }
  0x12   :  { %p366_p9 = pnand %p365_p8, %p359_p5 }
  0x14   :  { %369 = shalt.err (!%p366_p9)
}
  0x15   :  { %33 = dma.hbm_to_vmem [thread:$0]  %s436_s2, 128, %s31_s15, [#allocation7]  }
  0x16   :  { %378 = dma.done.wait [#allocation4], 128  }
  0x17   :  { %379 = vsyncadd [#allocation4], 4294967168 }
  0x18   :  { %380 = dma.done.wait [#allocation7], 128  }
  0x19   :  { %381 = vsyncadd [#allocation7], 4294967168  ;;  %s386_s22 = smov 0.0   ;;  %s387_s25 = smov 4.6051   ;;  %v40_v2 = vld [vmem:[#allocation3] sm:$0xff] }
  0x1a   :  { %s43_s1 = smax.f32 %s386_s22, %s434_s0  ;;  %vm50_vm0 = vcmask 261120   ;;  %v41_v3 = vld [vmem:[#allocation6] sm:$0xff]  ;;  %v49_v4 = vmul.f32 %v40_v2, %v40_v2  ;;  %v388_v9 = vmov 0.0   ;;  %vm389_vm1 = vmmov 0   ;;  %s390_s5 = smov [#allocation8]  }
  0x1b   :  { %s44_s26 = smin.f32 %s387_s25, %s43_s1  ;;  %v57_v5 = vmul.f32 %v41_v3, %v41_v3  ;;  %298 = vmatprep.subr.mxu1 %v388_v9  ;;  %293 = vmatprep.subr.mxu0 %v388_v9  ;;  %vm216_vm2 = vcmask 64512   ;;  %vm242_vm3 = vcmask 7168  }
  0x1c   :  { %v45_v0 = vstv %s44_s26  ;;  %v51_v6 = vsel %vm50_vm0, %v49_v4, 0.0  ;;  %300 = vmatprep.mubr.msk.f32.mxu1 %vm389_vm1, %v388_v9  ;;  %295 = vmatprep.mubr.msk.f32.mxu0 %vm389_vm1, %v388_v9 }
  0x1d   :  { %v46_v1 = vmul.f32 1.442695, %v45_v0  ;;  %52 = vadd.xlane.f32.xlu0 %v51_v6  ;;  %v58_v7 = vsel %vm50_vm0, %v57_v5, 0.0 }
  0x1f   :  { %316 = vpow2.f32 %v46_v1 }
  0x21   :  { %59 = vadd.xlane.f32.xlu0 %v58_v7 }
  0x2c   :  { %v317_v8 = vpop.eup %316 }
  0x2d   :  { %303 = vpush %v317_v8 }
  0x5e   :  { %s304_s0 = spop %303 }
  0x5f   :  { %v64_v15 = vstv %s304_s0 }
  0xa6   :  { %v53_v10 = vpop.xlane.xlu0 %52 }
  0xa7   :  { %v54_v11 = vmax.f32 %v53_v10, 1e-24 }
  0xa9   :  { %318 = vrsqrt.f32 %v54_v11 }
  0xaa   :  { %v60_v12 = vpop.xlane.xlu0 %59 }
  0xab   :  { %v61_v13 = vmax.f32 %v60_v12, 1e-24 }
  0xad   :  { %320 = vrsqrt.f32 %v61_v13 }
  0xb6   :  { %v319_v14 = vpop.eup %318 }
  0xb7   :  { %v56_v16 = vmul.f32 %v319_v14, %v40_v2 }
  0xb9   :  { %v65_v17 = vmul.f32 %v64_v15, %v56_v16 }
  0xba   :  { %v321_v18 = vpop.eup %320 }
  0xbb   :  { %299 = vmatpush3.xpose.msk.msra.mxu1 %vm50_vm0, %v65_v17  ;;  %v63_v19 = vmul.f32 %v321_v18, %v41_v3 }
  0xbd   :  { %294 = vmatpush3.xpose.msk.msra.mxu0 %vm50_vm0, %v63_v19  ;;  %v212_v20 = vmul.f32 %v65_v17, %v63_v19 }
  0xbe   :  { %301 = vmatmul.mubr.msk.f32.vlgmr.msra.gmra.mxu1 %vm50_vm0, %v63_v19 }
  0xbf   :  { %v213_v36 = vsel %vm50_vm0, %v212_v20, 0.0 }
  0xc0   :  { %296 = vmatmul.mubr.msk.f32.vlgmr.msra.gmra.mxu0 %vm50_vm0, %v65_v17 }
 0x17e   :  { %v208_v21 = vpop.f32.mrf.mxu1 }
 0x17f   :  { %v229_v26 = vsel %vm216_vm2, %v208_v21, -inf }
 0x180   :  { %v138_v22 = vpop.f32.mrf.mxu0  ;;  %v302_v23 = vpop.f32.mrf.mxu1 }
 0x181   :  { %v217_v24 = vsel %vm216_vm2, %v138_v22, -inf }
 0x182   :  { %218 = vmax.xlane.f32.xlu1 %v217_v24  ;;  %v297_v25 = vpop.f32.mrf.mxu0 }
 0x186   :  { %230 = vmax.xlane.f32.xlu1 %v229_v26 }
 0x20b   :  { %v219_v27 = vpop.xlane.xlu1 %218 }
 0x20c   :  { %v220_v28 = vsub.f32 %v138_v22, %v219_v27 }
 0x20e   :  { %v221_v29 = vmul.f32 1.442695, %v220_v28 }
 0x20f   :  { %v231_v30 = vpop.xlane.xlu1 %230 }
 0x210   :  { %322 = vpow2.f32 %v221_v29  ;;  %v232_v31 = vsub.f32 %v208_v21, %v231_v30 }
 0x212   :  { %v233_v32 = vmul.f32 1.442695, %v232_v31 }
 0x214   :  { %324 = vpow2.f32 %v233_v32 }
 0x21d   :  { %v323_v33 = vpop.eup %322 }
 0x21e   :  { %v223_v34 = vsel %vm216_vm2, %v323_v33, 0.0 }
 0x21f   :  { %224 = vadd.xlane.f32.xlu0 %v223_v34 }
 0x221   :  { %v325_v35 = vpop.eup %324 }
 0x222   :  { %v235_v37 = vsel %vm216_vm2, %v325_v35, 0.0 }
 0x223   :  { %214 = vadd.xlane.f32.xlu0 %v213_v36  ;;  %236 = vadd.xlane.f32.xlu1 %v235_v37 }
 0x2a8   :  { %v225_v38 = vpop.xlane.xlu0 %224 }
 0x2a9   :  { %326 = vlog2.f32 %v225_v38 }
 0x2ac   :  { %v237_v39 = vpop.xlane.xlu1 %236  ;;  %v215_v44 = vpop.xlane.xlu0 %214 }
 0x2ad   :  { %328 = vlog2.f32 %v237_v39 }
 0x2b6   :  { %v327_v40 = vpop.eup %326 }
 0x2b7   :  { %v227_v41 = vmul.f32 0.6931472, %v327_v40 }
 0x2b9   :  { %v228_v42 = vadd.f32 %v227_v41, %v219_v27 }
 0x2ba   :  { %v329_v43 = vpop.eup %328 }
 0x2bb   :  { %v241_v45 = vsub.f32 %v228_v42, %v215_v44  ;;  %v239_v46 = vmul.f32 0.6931472, %v329_v43 }
 0x2bd   :  { %v243_v47 = vsel %vm242_vm3, %v241_v45, 0.0  ;;  %v240_v48 = vadd.f32 %v239_v46, %v231_v30 }
 0x2be   :  { %244 = vadd.xlane.f32.xlu1 %v243_v47 }
 0x2bf   :  { %v254_v49 = vsub.f32 %v240_v48, %v215_v44 }
 0x2c1   :  { %v255_v50 = vsel %vm242_vm3, %v254_v49, 0.0 }
 0x2c2   :  { %256 = vadd.xlane.f32.xlu0 %v255_v50 }
 0x347   :  { %v245_v51 = vpop.xlane.xlu1 %244 }
 0x348   :  { %v246_v52 = vrot.slane %v245_v51, 4 }
 0x34a   :  { %v247_v53 = vadd.f32 %v246_v52, %v245_v51 }
 0x34b   :  { %v257_v54 = vpop.xlane.xlu0 %256 }
 0x34c   :  { %v248_v55 = vrot.slane %v247_v53, 2  ;;  %v258_v56 = vrot.slane %v257_v54, 4 }
 0x34e   :  { %v249_v57 = vadd.f32 %v248_v55, %v247_v53  ;;  %v259_v58 = vadd.f32 %v258_v56, %v257_v54 }
 0x350   :  { %v260_v59 = vrot.slane %v259_v58, 2  ;;  %v250_v60 = vrot.slane %v249_v57, 1 }
 0x352   :  { %v261_v61 = vadd.f32 %v260_v59, %v259_v58  ;;  %v251_v62 = vadd.f32 %v250_v60, %v249_v57 }
 0x354   :  { %305 = vpush %v251_v62  ;;  %v262_v63 = vrot.slane %v261_v61, 1 }
 0x356   :  { %v263_v0 = vadd.f32 %v262_v63, %v261_v61 }
 0x358   :  { %307 = vpush %v263_v0 }
 0x385   :  { %s306_s2 = spop %305 }
 0x386   :  { %s253_s27 = smul.f32 0.125, %s306_s2 }
 0x389   :  { %s308_s28 = spop %307 }
 0x38a   :  { %s265_s29 = smul.f32 0.125, %s308_s28 }
 0x38c   :  { %s266_s30 = sadd.f32 %s265_s29, %s253_s27 }
 0x38e   :  { %s267_s4 = smul.f32 0.5, %s266_s30 }
 0x390   :  { %269 = sst [smem:[#allocation8]] %s267_s4 }
 0x391   :  { %277 = dma.smem_to_hbm %s390_s5, 16, %s437_s3, [#allocation5]  }
 0x392   :  { %382 = dma.done.wait [#allocation5], 16  }
 0x393   :  { %383 = vsyncadd [#allocation5], 4294967280 }
 0x394   :  { %281 = sfence }
 0x395   :  { %282 = vsyncpa [#allocation4], 1 }
 0x396   :  { %283 = vsyncpa [#allocation7], 1 }
 0x397   :  { %284 = vsyncpa [#allocation5], 1 }

</bundles_post_ra>
